<compile_context>
chip_gen: v7x
topology: tpu7x:2x2x1
jax: 0.10.0
libtpu: 0.0.40
codegen_flags: <defaults>
</compile_context>

<pallas_src>
import jax
import jax.numpy as jnp
import numpy as np
from jax.experimental import pallas as pl
from jax.experimental.pallas import tpu as pltpu

BN_EPS = 1e-5
VMEM_LIMIT_BYTES = 32 * 1024 * 1024   # raise v5e's 16 MiB scoped default; fits all gens
VMEM_TILE_BUDGET = 24 * 1024 * 1024   # sizing budget for TM (headroom under the limit)


def _round_up(x, m):
    return (x + m - 1) // m * m


def _cdiv(a, b):
    return (a + b - 1) // b


def _pick_tile_m(M, Kp, Cp, tile_m_max=1024):
    """Largest TM (multiple of 8, <= tile_m_max) whose pass-2 working set fits the VMEM
    budget, capped so the grid keeps >= 2 row tiles (v7x megacore sharding)."""
    per_row = 2 * Kp * 2 + 2 * Cp * 4          # cols double-buf (bf16) + out double-buf (f32)
    fixed = 2 * Kp * Cp * 2 + 8 * Cp * 4       # resident weights (2 bufs, bf16) + O(Cp) vecs
    tm = (VMEM_TILE_BUDGET - fixed) // per_row
    tm = max(8, min(tile_m_max, tm))
    tm = min(tm, max(8, _cdiv(M, 2)))          # keep nM >= 2
    return _round_up(tm, 8)


# ---------------------------------------------------------------------------
# Pass 1: conv matmul + per-channel sum / sum-of-squares (partials per core).
# ---------------------------------------------------------------------------
def conv_stats_kernel(cols_ref, w_ref, stats_ref, acc_ref):
    # cols: (TM, Kp) bf16, w: (Kp, Cp) bf16
    # stats: (1, 2, Cp) f32 output block (row0=sum, row1=sumsq) for this core
    # acc:   (2, Cp) f32 VMEM scratch accumulator
    i = pl.program_id(1)

    @pl.when(i == 0)
    def _init():
        acc_ref[...] = jnp.zeros_like(acc_ref)

    y = jnp.dot(cols_ref[...], w_ref[...], preferred_element_type=jnp.float32)
    acc_ref[0:1, :] += jnp.sum(y, axis=0, keepdims=True)
    acc_ref[1:2, :] += jnp.sum(y * y, axis=0, keepdims=True)

    @pl.when(i == pl.num_programs(1) - 1)
    def _finalize():
        stats_ref[0, :, :] = acc_ref[...]


# ---------------------------------------------------------------------------
# Pass 2: conv matmul + fused BatchNorm affine (precomputed scale/shift) + ReLU.
# ---------------------------------------------------------------------------
def bn_relu_kernel(scale_ref, shift_ref, cols_ref, w_ref, o_ref):
    y = jnp.dot(cols_ref[...], w_ref[...], preferred_element_type=jnp.float32)
    o_ref[...] = jnp.maximum(y * scale_ref[...] + shift_ref[...], 0.0).astype(o_ref.dtype)


# ---------------------------------------------------------------------------
# Wrapper
# ---------------------------------------------------------------------------
def conv_block_forward(x_nchw, w_oihw, bias, gamma, beta, pad, tile_m_max=1024):
    """Forward pass of conv_block. x_nchw: (N, Cin, H, W), w_oihw: (Cout, Cin, KH, KW)."""
    del bias  # cancelled exactly by training-mode BatchNorm's mean subtraction
    N, Cin, H, W = x_nchw.shape
    Cout, _, KH, KW = w_oihw.shape
    Hout = H + 2 * pad - KH + 1
    Wout = W + 2 * pad - KW + 1
    M = N * Hout * Wout
    K = KH * KW * Cin

    # ---- glue (plain JAX): layout conversion + im2col patch extraction ----
    x_nhwc = jnp.transpose(x_nchw, (0, 2, 3, 1))
    xp = jnp.pad(x_nhwc, ((0, 0), (pad, pad), (pad, pad), (0, 0)))
    patches = [xp[:, kh:kh + Hout, kw:kw + Wout, :] for kh in range(KH) for kw in range(KW)]
    cols = jnp.concatenate(patches, axis=-1).reshape(M, K)
    # (Cout, Cin, KH, KW) -> (KH, KW, Cin, Cout) -> (K, Cout): matches the patch ordering.
    w_mat = jnp.transpose(w_oihw, (2, 3, 1, 0)).reshape(K, Cout)

    # ---- lane-dense / (8,128)-aligned padding; bf16 MXU operands, f32 accumulation ----
    # Whole K / Cout live in one operand block, so 128-multiples suffice (Mosaic tiles the
    # MXU internally); 256-rounding would only add zero-padding HBM traffic here.
    Kp = _round_up(K, 128)
    Cp = _round_up(Cout, 128)
    TM = _pick_tile_m(M, Kp, Cp, tile_m_max)
    nM2 = _cdiv(_cdiv(M, TM), 2)      # row tiles per stats core
    nM = 2 * nM2
    Mp = nM * TM

    cols_p = jnp.zeros((Mp, Kp), jnp.bfloat16).at[:M, :K].set(cols.astype(jnp.bfloat16))
    w_p = jnp.zeros((Kp, Cp), jnp.bfloat16).at[:K, :Cout].set(w_mat.astype(jnp.bfloat16))

    bytes_cols = Mp * Kp * 2
    bytes_w = Kp * Cp * 2

    # ---- pass 1: per-channel sum / sum-of-squares (two partials, one per v7x core) ----
    stats_partial = pl.pallas_call(
        conv_stats_kernel,
        out_shape=jax.ShapeDtypeStruct((2, 2, Cp), jnp.float32),
        grid_spec=pltpu.PrefetchScalarGridSpec(
            num_scalar_prefetch=0,
            grid=(2, nM2),
            in_specs=[
                pl.BlockSpec((TM, Kp), lambda c, i: (c * nM2 + i, 0)),
                pl.BlockSpec((Kp, Cp), lambda c, i: (0, 0)),
            ],
            out_specs=pl.BlockSpec((1, 2, Cp), lambda c, i: (c, 0, 0)),
            scratch_shapes=[pltpu.VMEM((2, Cp), jnp.float32)],
        ),
        compiler_params=pltpu.CompilerParams(
            dimension_semantics=("parallel", "arbitrary"),
            vmem_limit_bytes=VMEM_LIMIT_BYTES,
        ),
        cost_estimate=pl.CostEstimate(
            flops=2 * Mp * Kp * Cp,
            transcendentals=0,
            bytes_accessed=bytes_cols + bytes_w + 2 * 2 * Cp * 4,
        ),
    )(cols_p, w_p)

    # ---- glue: fold batch stats + gamma/beta into one scale/shift (O(Cout) work) ----
    stats = stats_partial.sum(axis=0)                        # (2, Cp)
    inv_m = 1.0 / float(M)
    mean = stats[0] * inv_m
    var = jnp.maximum(stats[1] * inv_m - mean * mean, 0.0)   # clamp: never negative
    inv_std = jax.lax.rsqrt(var + BN_EPS)
    gamma_p = jnp.zeros((Cp,), jnp.float32).at[:Cout].set(gamma.reshape(Cout))
    beta_p = jnp.zeros((Cp,), jnp.float32).at[:Cout].set(beta.reshape(Cout))
    scale = (gamma_p * inv_std).reshape(1, Cp)                # padded lanes stay exactly 0
    shift = (beta_p - mean * gamma_p * inv_std).reshape(1, Cp)

    # ---- pass 2: recompute matmul + fused affine + ReLU, lane-dense f32 store ----
    out_flat = pl.pallas_call(
        bn_relu_kernel,
        out_shape=jax.ShapeDtypeStruct((Mp, Cp), jnp.float32),
        grid_spec=pltpu.PrefetchScalarGridSpec(
            num_scalar_prefetch=0,
            grid=(nM,),
            in_specs=[
                pl.BlockSpec((1, Cp), lambda i: (0, 0)),
                pl.BlockSpec((1, Cp), lambda i: (0, 0)),
                pl.BlockSpec((TM, Kp), lambda i: (i, 0)),
                pl.BlockSpec((Kp, Cp), lambda i: (0, 0)),
            ],
            out_specs=pl.BlockSpec((TM, Cp), lambda i: (i, 0)),
        ),
        compiler_params=pltpu.CompilerParams(
            dimension_semantics=("parallel",),
            vmem_limit_bytes=VMEM_LIMIT_BYTES,
        ),
        cost_estimate=pl.CostEstimate(
            flops=2 * Mp * Kp * Cp,
            transcendentals=0,
            bytes_accessed=bytes_cols + bytes_w + Mp * Cp * 4 + 2 * Cp * 4,
        ),
    )(scale, shift, cols_p, w_p)

    # ---- glue: strip padding, back to NCHW (f32 output to match the torch module) ----
    out = out_flat[:M, :Cout].reshape(N, Hout, Wout, Cout)
    return jnp.transpose(out, (0, 3, 1, 2))


# ---------------------------------------------------------------------------
# Pure-JAX reference (mirrors torch: conv2d -> BatchNorm2d(train) -> ReLU, NCHW)
# ---------------------------------------------------------------------------
def reference_forward(x, w, b, gamma, beta, pad):
    conv = jax.lax.conv_general_dilated(
        x, w, window_strides=(1, 1), padding=[(pad, pad), (pad, pad)],
        dimension_numbers=("NCHW", "OIHW", "NCHW")) + b.reshape(1, -1, 1, 1)
    mean = conv.mean(axis=(0, 2, 3), keepdims=True)
    var = ((conv - mean) ** 2).mean(axis=(0, 2, 3), keepdims=True)
    y = (conv - mean) / jnp.sqrt(var + BN_EPS)
    y = y * gamma.reshape(1, -1, 1, 1) + beta.reshape(1, -1, 1, 1)
    return jnp.maximum(y, 0.0)


if __name__ == "__main__":
    # conv_block(inp=4, out=8, kernal=3, pad=1, bbin=8)
    N, Cin, H, W = 2, 4, 16, 16
    Cout, KH, KW, pad = 8, 3, 3, 1

    key = jax.random.PRNGKey(0)
    kx, kw_, kb = jax.random.split(key, 3)

    x = jax.random.normal(kx, (N, Cin, H, W), dtype=jnp.float32)

    # Deterministic parameter init (shapes match nn.Conv2d / nn.BatchNorm2d defaults).
    fan_in = Cin * KH * KW
    bound = 1.0 / np.sqrt(fan_in)
    weight = jax.random.uniform(kw_, (Cout, Cin, KH, KW), jnp.float32, -bound, bound)
    bias = jax.random.uniform(kb, (Cout,), jnp.float32, -bound, bound)
    gamma = jnp.ones((Cout,), jnp.float32)   # BatchNorm2d weight init
    beta = jnp.zeros((Cout,), jnp.float32)   # BatchNorm2d bias init

    out = conv_block_forward(x, weight, bias, gamma, beta, pad)
    out = jax.block_until_ready(out)
    assert out.shape == (N, Cout, H, W), out.shape

    # Reference with bf16-rounded matmul operands (matches the kernel's bf16 MXU path):
    xb = x.astype(jnp.bfloat16).astype(jnp.float32)
    wb = weight.astype(jnp.bfloat16).astype(jnp.float32)
    ref_bf16 = jax.block_until_ready(reference_forward(xb, wb, bias, gamma, beta, pad))
    assert jnp.allclose(out, ref_bf16, atol=1e-3, rtol=1e-3), \
        float(jnp.max(jnp.abs(out - ref_bf16)))

    # Full-f32 reference (loose tolerance accounts for the deliberate bf16 operand cast):
    ref_f32 = jax.block_until_ready(reference_forward(x, weight, bias, gamma, beta, pad))
    assert jnp.allclose(out, ref_f32, atol=5e-2, rtol=5e-2), \
        float(jnp.max(jnp.abs(out - ref_f32)))

    print("KERNEL_OK")
</pallas_src>

<mosaic_0001>
module attributes {stable_mosaic.version = 11 : i64} {
  func.func @conv_stats_kernel(%arg0: i32, %arg1: i32, %arg2: memref<256x128xbf16, #tpu.memory_space<vmem>>, %arg3: memref<128x128xbf16, #tpu.memory_space<vmem>>, %arg4: memref<1x2x128xf32, #tpu.memory_space<vmem>>, %arg5: memref<2x128xf32, #tpu.memory_space<vmem>>) attributes {dimension_semantics = [#tpu.dimension_semantics<parallel>, #tpu.dimension_semantics<arbitrary>], iteration_bounds = array<i64: 2, 1>, scalar_prefetch = 0 : i64, scratch_operands = 1 : i64, tpu.core_type = #tpu.core_type<tc>, window_params = [{transform_indices = @transform_0, window_bounds = array<i64: 256, 128>}, {pipeline_mode = #tpu.pipeline_mode<synchronous>, transform_indices = @transform_1, window_bounds = array<i64: 128, 128>}, {transform_indices = @transform_2, window_bounds = array<i64: 1, 2, 128>}]} {
    %c0_i32 = arith.constant 0 : i32
    %0 = arith.cmpi eq, %arg1, %c0_i32 : i32
    %1 = arith.extui %0 : i1 to i32
    %c0_i32_0 = arith.constant 0 : i32
    %2 = arith.cmpi ne, %1, %c0_i32_0 : i32
    scf.if %2 {
      %cst_15 = arith.constant 0.000000e+00 : f32
      %20 = vector.broadcast %cst_15 : f32 to vector<2x128xf32>
      %c0_16 = arith.constant 0 : index
      %c0_17 = arith.constant 0 : index
      %21 = vector.load %arg5[%c0_16, %c0_17] : memref<2x128xf32, #tpu.memory_space<vmem>>, vector<2x128xf32>
      tpu.vector_store %arg5[%c0_16, %c0_17], %20 {strides = array<i32>} : memref<2x128xf32, #tpu.memory_space<vmem>>, vector<2x128xf32>,
    } else {
    }
    %c0 = arith.constant 0 : index
    %c0_1 = arith.constant 0 : index
    %3 = vector.load %arg2[%c0, %c0_1] : memref<256x128xbf16, #tpu.memory_space<vmem>>, vector<256x128xbf16>
    %c0_2 = arith.constant 0 : index
    %c0_3 = arith.constant 0 : index
    %4 = vector.load %arg3[%c0_2, %c0_3] : memref<128x128xbf16, #tpu.memory_space<vmem>>, vector<128x128xbf16>
    %cst = arith.constant dense<0.000000e+00> : vector<256x128xf32>
    %5 = tpu.matmul %3, %4, %cst {dimension_numbers = #tpu.dot_dimension_numbers<[1], [0], [0], [1], [0, 0, 1, 1], [], []>} : vector<256x128xbf16>, vector<128x128xbf16>, vector<256x128xf32> -> vector<256x128xf32>
    %c0_4 = arith.constant 0 : index
    %c0_5 = arith.constant 0 : index
    %6 = vector.load %arg5[%c0_4, %c0_5] : memref<2x128xf32, #tpu.memory_space<vmem>>, vector<1x128xf32>
    %cst_6 = arith.constant dense<0.000000e+00> : vector<128xf32>
    %7 = vector.multi_reduction <add>, %5, %cst_6 [0] : vector<256x128xf32> to vector<128xf32>
    %8 = vector.shape_cast %7 : vector<128xf32> to vector<1x128xf32>
    %9 = arith.addf %6, %8 : vector<1x128xf32>
    %c0_7 = arith.constant 0 : index
    %c0_8 = arith.constant 0 : index
    %10 = vector.load %arg5[%c0_7, %c0_8] : memref<2x128xf32, #tpu.memory_space<vmem>>, vector<1x128xf32>
    tpu.vector_store %arg5[%c0_7, %c0_8], %9 {strides = array<i32>} : memref<2x128xf32, #tpu.memory_space<vmem>>, vector<1x128xf32>,
    %c1 = arith.constant 1 : index
    %c0_9 = arith.constant 0 : index
    %11 = vector.load %arg5[%c1, %c0_9] : memref<2x128xf32, #tpu.memory_space<vmem>>, vector<1x128xf32>
    %12 = arith.mulf %5, %5 : vector<256x128xf32>
    %cst_10 = arith.constant dense<0.000000e+00> : vector<128xf32>
    %13 = vector.multi_reduction <add>, %12, %cst_10 [0] : vector<256x128xf32> to vector<128xf32>
    %14 = vector.shape_cast %13 : vector<128xf32> to vector<1x128xf32>
    %15 = arith.addf %11, %14 : vector<1x128xf32>
    %c1_11 = arith.constant 1 : index
    %c0_12 = arith.constant 0 : index
    %16 = vector.load %arg5[%c1_11, %c0_12] : memref<2x128xf32, #tpu.memory_space<vmem>>, vector<1x128xf32>
    tpu.vector_store %arg5[%c1_11, %c0_12], %15 {strides = array<i32>} : memref<2x128xf32, #tpu.memory_space<vmem>>, vector<1x128xf32>,
    %c0_i32_13 = arith.constant 0 : i32
    %17 = arith.cmpi eq, %arg1, %c0_i32_13 : i32
    %18 = arith.extui %17 : i1 to i32
    %c0_i32_14 = arith.constant 0 : i32
    %19 = arith.cmpi ne, %18, %c0_i32_14 : i32
    scf.if %19 {
      %c0_15 = arith.constant 0 : index
      %c0_16 = arith.constant 0 : index
      %20 = vector.load %arg5[%c0_15, %c0_16] : memref<2x128xf32, #tpu.memory_space<vmem>>, vector<2x128xf32>
      %c0_17 = arith.constant 0 : index
      %c0_18 = arith.constant 0 : index
      %c0_19 = arith.constant 0 : index
      %21 = vector.load %arg4[%c0_17, %c0_18, %c0_19] : memref<1x2x128xf32, #tpu.memory_space<vmem>>, vector<1x2x128xf32>
      %22 = vector.shape_cast %21 : vector<1x2x128xf32> to vector<2x128xf32>
      %23 = vector.shape_cast %20 : vector<2x128xf32> to vector<1x2x128xf32>
      tpu.vector_store %arg4[%c0_17, %c0_18, %c0_19], %23 {strides = array<i32>} : memref<1x2x128xf32, #tpu.memory_space<vmem>>, vector<1x2x128xf32>,
    } else {
    }
    return
  }
  func.func @transform_0(%arg0: i32, %arg1: i32) -> (i32, i32) {
    %c1_i32 = arith.constant 1 : i32
    %0 = arith.muli %arg0, %c1_i32 : i32
    %1 = arith.addi %0, %arg1 : i32
    %c0_i32 = arith.constant 0 : i32
    %c0_i32_0 = arith.constant 0 : i32
    return %1, %c0_i32 : i32, i32
  }
  func.func @transform_1(%arg0: i32, %arg1: i32) -> (i32, i32) {
    %c0_i32 = arith.constant 0 : i32
    %c0_i32_0 = arith.constant 0 : i32
    %c0_i32_1 = arith.constant 0 : i32
    return %c0_i32, %c0_i32_0 : i32, i32
  }
  func.func @transform_2(%arg0: i32, %arg1: i32) -> (i32, i32, i32) {
    %c0_i32 = arith.constant 0 : i32
    %c0_i32_0 = arith.constant 0 : i32
    %c0_i32_1 = arith.constant 0 : i32
    return %arg0, %c0_i32, %c0_i32_0 : i32, i32, i32
  }
}

</mosaic_0001>

<bundles_post_ra>
// kernel: tpu_custom_call.1
= control target key start
LH: loop header
LB: loop body
LE: loop exit
PB: predicated region body
PF: predicated region fallthrough
CT: control target
= control target key end

     0   :  { %7 = vsyncpa [#allocation4], 0  ;;  %s1461_s0 = inlined_call_operand.hbm [shape: bf16[512,128], index: 0, kind: input, shape index: {}]   ;;  %s1462_s1 = inlined_call_operand.hbm [shape: bf16[128,128], index: 1, kind: input, shape index: {}]   ;;  %s1463_s2 = inlined_call_operand.hbm [shape: f32[2,2,128], index: 2, kind: output, shape index: {}]  }
   0x1   :  { %9 = vsyncpa [#allocation4 + $0x1], 0 }
   0x2   :  { %10 = vsyncpa [#allocation7], 0 }
   0x3   :  { %11 = vsyncpa [#allocation5], 0 }
   0x4   :  { %13 = vsyncpa [#allocation5 + $0x1], 0  ;;  %s1169_s9 = smov 0   ;;  %s1171_s10 = smov 0  }
   0x5   :  { %s1173_s11 = smov 0   ;;  %s1175_s12 = smov 0  }
   0x6   :  { %s1177_s13 = smov 0   ;;  %s1179_s14 = smov 0  }
   0x7 LB: > { %s773_s15 = sadd.s32 4294967295, %s1146_s14   ;;  %s774_s16 = sadd.s32 4294967294, %s1146_s14   ;;  %s1146_s14 = sphi %s1179_s14, %s19_s14   ;;  %s1142_s13 = sphi %s1177_s13, %s1487_s13   ;;  %s1138_s12 = sphi %s1175_s12, %s1486_s12   ;;  %s1134_s11 = sphi %s1173_s11, %s1485_s11   ;;  %s1130_s10 = sphi %s1171_s10, %s1484_s10   ;;  %s1126_s9 = sphi %s1169_s9, %s1483_s9  }
   0x8   : > { %p53_p0 = scmp.ne.s32.totalorder %s1130_s10, %s1126_s9  ;;  %p1203_p1 = scmp.eq.s32.totalorder %s773_s15, 0 }
   0x9   : > { %p1207_p2 = scmp.eq.s32.totalorder %s773_s15, 1  ;;  %p104_p3 = scmp.eq.s32.totalorder %s774_s16, 1 }
   0xa   : > { %s1468_s17 = scalar_select %p1203_p1, 1, 0 }
   0xb   : > { %s1469_s18 = scalar_select %p1207_p2, 1, 0 }
   0xc   : > { %p1213_p4 = por %p1203_p1, %p53_p0  ;;  %p775_p5 = scmp.ge.s32.totalorder %s1146_s14, 1 }
   0xd   : > { %p1218_p6 = por %p104_p3, %p53_p0  ;;  %p111_p7 = scmp.lt.s32.totalorder %s1146_s14, 3 }
   0xe   : > { %s1470_s19 = scalar_select %p1213_p4, 1, 0 }
   0xf   : > { %s1471_s20 = scalar_select %p1218_p6, 1, 0 }
  0x10   : > { %p1223_p8 = pnand %p775_p5, %p111_p7  ;;  %s1148_s22 = smov [#allocation6]  }
  0x11   : > { %s123_s23 = sshll.u32 %s1148_s22, 4  ;;  %s31_s25 = sadd.s32 1, %s1142_s13  ;;  %s124_s23 = int_to_ptr.vmem [resolvable:$true] %s123_s23 }
  0x12   : > { %s1472_s21 = scalar_select %p1223_p8, 1, 0 }
  0x13   : > { %p910_p9 = pneg %p1223_p8  ;;  %s1002_s28 = scalar_lea.hbm %s1462_s1, 1024 }
  0x14   : > { %p1003_p12 = scmp.ne.s32.totalorder %s1462_s1, %s1002_s28  ;;  %p1009_p5 = scmp.lt.u32.totalorder %s1002_s28, %s1462_s1 }
  0x15   : > { %p1232_p11 = pnand %p910_p9, %p1203_p1 }
  0x17   : > { %p1004_p13 = pneg %p1232_p11 }
  0x19   : > { %p1005_p0 = pnand %p1004_p13, %p1003_p12 }
  0x1b   : > { %p1006_p3 = pneg %p1005_p0 }
  0x1d   : > { %p1011_p7 = pnand %p1009_p5, %p1006_p3 }
  0x1f   : > { %1014 = shalt.err (!%p1011_p7)
}
  0x20   : > { %s1015_s5 = scalar_lea.vmem %s124_s23, 1024  ;;  %p1023_p1 = scmp.lt.s32.totalorder %s124_s23, %s124_s23 }
  0x21   : > { %p1016_p9 = scmp.ne.s32.totalorder %s124_s23, %s1015_s5  ;;  %p1024_p4 = scmp.lt.s32.totalorder %s1015_s5, %s1015_s5 }
  0x23   : > { %p1018_p10 = pnand %p1016_p9, %p1004_p13  ;;  %p1025_p8 = por %p1024_p4, %p1023_p1 }
  0x25   : > { %p1019_p6 = pneg %p1018_p10 }
  0x27   : > { %p1026_p2 = pnand %p1025_p8, %p1019_p6 }
  0x29   : > { %1029 = shalt.err (!%p1026_p2)
}
  0x2a   : > { %s1149_s6 = smov 64   ;;  %s1150_s7 = smov 4  }
  0x2b   : > { %913 = dma.hbm_to_vmem [thread:$0]  (!%p1232_p11), %s1462_s1, 1024, %s124_s23, [#allocation7], %s1149_s6, %s1149_s6, %s1150_s7  }
  0x2c   : > { %p33_p1 = scmp.ge.s32.totalorder %s31_s25, 2  ;;  %s40_s16 = sadd.s32 1, %s1134_s11 }
  0x2d   : > { %p47_p2 = scmp.ne.s32.totalorder %s1134_s11, %s1130_s10  ;;  %p48_p4 = scmp.eq.s32.totalorder %s1146_s14, 0 }
  0x2e   : > { %s1489_s25 = smov (%p33_p1, %s31_s25), 0  ;;  %p1475_p8 = scmp.ne.s32.totalorder %s1469_s18, 0 }
  0x2f   : > { %p1262_p6 = por %p48_p4, %p47_p2  ;;  %s37_s26 = ssub.s32 %s1142_s13, %s1489_s25 }
  0x30   : > { %p1268_p10 = por %p1475_p8, %p47_p2  ;;  %p923_p12 = scmp.lt.s32.totalorder %s1146_s14, 2 }
  0x31   : > { %p38_p11 = scmp.eq.s32.totalorder %s37_s26, 0  ;;  %s137_s23 = sand.u32 1, %s1134_s11  }
  0x32   : > { %s778_s27 = sshll.u32 %s137_s23, 7  ;;  %s813_s29 = sshll.u32 %s1142_s13, 11 }
  0x33   : > { %s1277_s28 = scalar_select %p38_p11, %s1134_s11, %s40_s16  }
  0x34   : > { %s1283_s4 = scalar_lea.hbm %s1461_s0, %s813_s29  ;;  %s141_s18 = scalar_lea.vmem [#allocation3], %s778_s27 }
  0x35   : > { %s149_s5 = sshll.u32 %s141_s18, 4  ;;  %p1289_p13 = pnand %p923_p12, %p1262_p6  ;;  %s1285_s5 = int_to_ptr.vmem [resolvable:$true] %s149_s5 }
  0x36   : > { %s1293_s15 = scalar_lea.sflag [#allocation4], %s137_s23  ;;  %s1030_s16 = scalar_lea.hbm %s1283_s4, 2048 }
  0x37   : > { %p1031_p0 = scmp.ne.s32.totalorder %s1283_s4, %s1030_s16  ;;  %p1032_p3 = pneg %p1289_p13 }
  0x38   : > { %s1035_s22 = scalar_lea.hbm %s1461_s0, 4096  ;;  %p1036_p9 = scmp.lt.u32.totalorder %s1283_s4, %s1461_s0 }
  0x39   : > { %p1033_p5 = pnand %p1032_p3, %p1031_p0  ;;  %p1037_p1 = scmp.lt.u32.totalorder %s1035_s22, %s1030_s16 }
  0x3a   : > { %p1039_p4 = scmp.lt.u32.totalorder %s1030_s16, %s1283_s4 }
  0x3b   : > { %p1034_p7 = pneg %p1033_p5  ;;  %p1038_p2 = por %p1037_p1, %p1036_p9 }
  0x3d   : > { %p1040_p6 = por %p1039_p4, %p1038_p2 }
  0x3f   : > { %p1041_p8 = pnand %p1040_p6, %p1034_p7 }
  0x41   : > { %1044 = shalt.err (!%p1041_p8)
}
  0x42   : > { %s1045_s23 = scalar_lea.vmem %s1285_s5, 2048  ;;  %s1151_s3 = smov [#allocation3]  }
  0x43   : > { %p1046_p12 = scmp.ne.s32.totalorder %s1285_s5, %s1045_s23  ;;  %s1050_s18 = sshll.u32 %s1151_s3, 4  ;;  %s1051_s18 = int_to_ptr.vmem [resolvable:$false] %s1050_s18 }
  0x44   : > { %s1052_s26 = scalar_lea.vmem %s1051_s18, 4096  ;;  %p1053_p5 = scmp.lt.s32.totalorder %s1285_s5, %s1051_s18 }
  0x45   : > { %p1048_p11 = pnand %p1046_p12, %p1032_p3  ;;  %p1054_p9 = scmp.lt.s32.totalorder %s1052_s26, %s1045_s23 }
  0x47   : > { %p1049_p0 = pneg %p1048_p11  ;;  %p1055_p1 = por %p1054_p9, %p1053_p5 }
  0x49   : > { %p1056_p2 = pnand %p1055_p1, %p1049_p0 }
  0x4b   : > { %1059 = shalt.err (!%p1056_p2)
}
  0x4c   : > { %917 = dma.hbm_to_vmem [thread:$0]  (!%p1289_p13), %s1283_s4, 2048, %s1285_s5, %s1293_s15, %s1149_s6, %s1149_s6, %s1150_s7  }
  0x4d   : > { %p1478_p3 = scmp.ne.s32.totalorder %s1472_s21, 0 }
  0x4e   : > { %s1327_s16 = sand.u32 (!%p1478_p3), 1, %s1130_s10   ;;  %p1479_p7 = scmp.ne.s32.totalorder (!%p1478_p3), %s1470_s19, 0 }
  0x4f   : > { %161 = sbr.rel (%p1478_p3) target bundleno = 438 (0x1b6), region = 28  ;;  %s782_s27 = sshll.u32 (!%p1478_p3), %s1327_s16, 7 }
  0x50   : > { %s164_s22 = scalar_lea.sflag (!%p1478_p3), [#allocation4], %s1327_s16  ;;  %s1331_s29 = scalar_lea.vmem (!%p1478_p3), [#allocation3], %s782_s27 }
  0x56   : > { %1113 = dma.done.wait (%p1479_p7), %s164_s22, 2048  }
  0x57   : > { %1115 = vsyncadd (%p1479_p7), %s164_s22, 4294965248  ;;  %p1480_p13 = scmp.ne.s32.totalorder %s1468_s17, 0 }
  0x59   : > { %1117 = dma.done.wait (%p1480_p13), [#allocation7], 1024  }
  0x5a   : > { %1119 = vsyncadd (%p1480_p13), [#allocation7], 4294966272  ;;  %v978_v0 = vld [vmem:[#allocation6] sm:$0xff]   ;;  %v979_v1 = vld [vmem:[#allocation6 + $0x8] sm:$0xff]   ;;  %v1152_v24 = vmov 0.0   ;;  %s784_s17 = sshll.u32 %s1327_s16, 1 }
  0x5b   : > { %838 = vmatprep.subr.bf16.mxu0 %v978_v0  ;;  %886 = vmatprep.subr.bf16.mxu1 %v978_v0  ;;  %v980_v2 = vld [vmem:[#allocation6 + $0x10] sm:$0xff]   ;;  %v981_v3 = vld [vmem:[#allocation6 + $0x18] sm:$0xff]   ;;  %v986_v4 = vld [vmem:[%s1331_s29] sm:$0xff]   ;;  %199 = vst [vmem:[#allocation2] sm:$0x3] %v1152_v24  ;;  %s810_s19 = sshll.u32 %s1138_s12, 5 }
  0x5c   : > { %839 = vmatpush3.bf16.msra.mxu0 %v978_v0  ;;  %894 = vmatpush3.bf16.msra.mxu1 %v978_v0  ;;  %v982_v5 = vld [vmem:[#allocation6 + $0x20] sm:$0xff]   ;;  %v983_v6 = vld [vmem:[#allocation6 + $0x28] sm:$0xff]   ;;  %v984_v8 = vld [vmem:[#allocation6 + $0x30] sm:$0xff]   ;;  %s191_s21 = scalar_lea.vmem [#allocation8], %s784_s17  ;;  %s1412_s5 = scalar_lea.hbm %s1463_s2, %s810_s19 }
  0x5d   : > { %840 = vmatprep.subr.bf16.mxu0 %v979_v1  ;;  %887 = vmatprep.subr.bf16.mxu1 %v979_v1  ;;  %v994_v7 = vld [vmem:[%s1331_s29 + $0x40] sm:$0xff]   ;;  %v985_v9 = vld [vmem:[#allocation6 + $0x38] sm:$0xff]   ;;  %v987_v10 = vld [vmem:[%s1331_s29 + $0x8] sm:$0xff]   ;;  %s684_s6 = sshll.u32 %s191_s21, 4  ;;  %s671_s8 = scalar_lea.sflag [#allocation5], %s1327_s16  ;;  %s1414_s6 = int_to_ptr.vmem [resolvable:$true] %s684_s6 }
  0x5e   : > { %854 = vmatprep.mubr.bf16.mxu0 %v986_v4  ;;  %870 = vmatprep.mubr.bf16.mxu1 %v994_v7  ;;  %v995_v11 = vld [vmem:[%s1331_s29 + $0x48] sm:$0xff]   ;;  %v988_v12 = vld [vmem:[%s1331_s29 + $0x10] sm:$0xff]   ;;  %v989_v14 = vld [vmem:[%s1331_s29 + $0x18] sm:$0xff]   ;;  %s1060_s15 = scalar_lea.vmem %s1414_s6, 32  ;;  %s1153_s12 = smov [#allocation8]  }
  0x5f   : > { %v996_v13 = vld [vmem:[%s1331_s29 + $0x50] sm:$0xff]   ;;  %v997_v15 = vld [vmem:[%s1331_s29 + $0x58] sm:$0xff]   ;;  %v990_v16 = vld [vmem:[%s1331_s29 + $0x20] sm:$0xff]   ;;  %p1061_p4 = scmp.ne.s32.totalorder %s1414_s6, %s1060_s15  ;;  %s1064_s30 = sshll.u32 %s1153_s12, 4  ;;  %s1065_s30 = int_to_ptr.vmem [resolvable:$false] %s1064_s30 }
  0x60   : > { %841 = vmatpush3.bf16.msra.mxu0 %v979_v1  ;;  %895 = vmatpush3.bf16.msra.mxu1 %v979_v1  ;;  %v998_v17 = vld [vmem:[%s1331_s29 + $0x60] sm:$0xff]   ;;  %v991_v18 = vld [vmem:[%s1331_s29 + $0x28] sm:$0xff]   ;;  %v992_v20 = vld [vmem:[%s1331_s29 + $0x30] sm:$0xff]   ;;  %s1066_s23 = scalar_lea.vmem %s1065_s30, 64  ;;  %p1067_p12 = scmp.lt.s32.totalorder %s1414_s6, %s1065_s30 }
  0x61   : > { %842 = vmatprep.subr.bf16.mxu0 %v980_v2  ;;  %888 = vmatprep.subr.bf16.mxu1 %v980_v2  ;;  %v999_v19 = vld [vmem:[%s1331_s29 + $0x68] sm:$0xff]   ;;  %v1000_v21 = vld [vmem:[%s1331_s29 + $0x70] sm:$0xff]   ;;  %v993_v22 = vld [vmem:[%s1331_s29 + $0x38] sm:$0xff]   ;;  %p1062_p6 = pnand %p1061_p4, %p1268_p10  ;;  %p1068_p11 = scmp.lt.s32.totalorder %s1066_s23, %s1060_s15 }
  0x62   : > { %v1001_v23 = vld [vmem:[%s1331_s29 + $0x78] sm:$0xff]  }
  0x63   : > { %p1063_p8 = pneg %p1062_p6  ;;  %p1069_p0 = por %p1068_p11, %p1067_p12 }
  0x64   : > { %843 = vmatpush3.bf16.msra.mxu0 %v980_v2  ;;  %896 = vmatpush3.bf16.msra.mxu1 %v980_v2 }
  0x65   : > { %844 = vmatprep.subr.bf16.mxu0 %v981_v3  ;;  %889 = vmatprep.subr.bf16.mxu1 %v981_v3  ;;  %p1070_p5 = pnand %p1069_p0, %p1063_p8 }
  0x68   : > { %845 = vmatpush3.bf16.msra.mxu0 %v981_v3  ;;  %897 = vmatpush3.bf16.msra.mxu1 %v981_v3 }
  0x69   : > { %846 = vmatprep.subr.bf16.mxu0 %v982_v5  ;;  %890 = vmatprep.subr.bf16.mxu1 %v982_v5 }
  0x6c   : > { %847 = vmatpush3.bf16.msra.mxu0 %v982_v5  ;;  %898 = vmatpush3.bf16.msra.mxu1 %v982_v5 }
  0x6d   : > { %848 = vmatprep.subr.bf16.mxu0 %v983_v6  ;;  %891 = vmatprep.subr.bf16.mxu1 %v983_v6 }
  0x70   : > { %849 = vmatpush3.bf16.msra.mxu0 %v983_v6  ;;  %899 = vmatpush3.bf16.msra.mxu1 %v983_v6 }
  0x71   : > { %850 = vmatprep.subr.bf16.mxu0 %v984_v8  ;;  %892 = vmatprep.subr.bf16.mxu1 %v984_v8 }
  0x74   : > { %851 = vmatpush3.bf16.msra.mxu0 %v984_v8  ;;  %900 = vmatpush3.bf16.msra.mxu1 %v984_v8 }
  0x75   : > { %852 = vmatprep.subr.bf16.mxu0 %v985_v9  ;;  %893 = vmatprep.subr.bf16.mxu1 %v985_v9 }
  0x78   : > { %853 = vmatpush3.bf16.msra.mxu0 %v985_v9  ;;  %901 = vmatpush3.bf16.msra.mxu1 %v985_v9 }
  0x7b   : > { %855 = vmatmul.mubr.bf16.vlgmr.msra.gmra.mrb[0].mxu0 %v987_v10  ;;  %871 = vmatmul.mubr.bf16.vlgmr.msra.gmra.mrb[0].mxu1 %v995_v11 }
  0x7c   : > { %858 = vmatprep.mubr.bf16.mxu0 %v988_v12  ;;  %874 = vmatprep.mubr.bf16.mxu1 %v996_v13 }
  0x83   : > { %859 = vmatmul.mubr.bf16.gmra.mrb[4].mxu0 %v989_v14  ;;  %875 = vmatmul.mubr.bf16.gmra.mrb[4].mxu1 %v997_v15 }
  0x84   : > { %862 = vmatprep.mubr.bf16.mxu0 %v990_v16  ;;  %878 = vmatprep.mubr.bf16.mxu1 %v998_v17 }
  0x8b   : > { %863 = vmatmul.mubr.bf16.gmra.mrb[8].mxu0 %v991_v18  ;;  %879 = vmatmul.mubr.bf16.gmra.mrb[8].mxu1 %v999_v19 }
  0x8c   : > { %866 = vmatprep.mubr.bf16.mxu0 %v992_v20  ;;  %882 = vmatprep.mubr.bf16.mxu1 %v1000_v21 }
  0x93   : > { %867 = vmatmul.mubr.bf16.gmra.mrb[12].mxu0 %v993_v22  ;;  %883 = vmatmul.mubr.bf16.gmra.mrb[12].mxu1 %v1001_v23 }
 0x14e   : > { %v856_v25 = vpop.f32.mrb[0].mxu0  ;;  %v1357_v26 = vpop.f32.mrb[0].mxu1 }
 0x14f   : > { %v426_v27 = vpop.f32.mrb[1].mxu0  ;;  %v1359_v28 = vpop.f32.mrb[1].mxu1  ;;  %v596_v36 = vmul.f32 %v856_v25, %v856_v25 }
 0x150   : > { %v857_v29 = vpop.f32.mrb[2].mxu0  ;;  %v1361_v30 = vpop.f32.mrb[2].mxu1  ;;  %v594_v33 = vmul.f32 %v426_v27, %v426_v27 }
 0x151   : > { %v429_v31 = vpop.f32.mrb[3].mxu0  ;;  %v1363_v32 = vpop.f32.mrb[3].mxu1  ;;  %v597_v39 = vmul.f32 %v857_v29, %v857_v29 }
 0x152   : > { %v554_v34 = vadd.f32 %v429_v31, %v426_v27  ;;  %v595_v35 = vmul.f32 %v429_v31, %v429_v31 }
 0x154   : > { %v555_v37 = vadd.f32 %v856_v25, %v554_v34  ;;  %v626_v38 = vadd.f32 %v595_v35, %v594_v33 }
 0x156   : > { %v627_v40 = vadd.f32 %v626_v38, %v596_v36  ;;  %v860_v41 = vpop.f32.mrb[4].mxu0  ;;  %v556_v42 = vadd.f32 %v857_v29, %v555_v37  ;;  %v1365_v43 = vpop.f32.mrb[4].mxu1 }
 0x157   : > { %v442_v44 = vpop.f32.mrb[5].mxu0  ;;  %v1367_v45 = vpop.f32.mrb[5].mxu1  ;;  %v600_v56 = vmul.f32 %v860_v41, %v860_v41 }
 0x158   : > { %v557_v46 = vadd.f32 %v556_v42, %v442_v44  ;;  %v598_v47 = vmul.f32 %v442_v44, %v442_v44  ;;  %v628_v48 = vadd.f32 %v627_v40, %v597_v39  ;;  %v861_v49 = vpop.f32.mrb[6].mxu0  ;;  %v1369_v50 = vpop.f32.mrb[6].mxu1  ;;  %v610_v42 = vmul.f32 %v1359_v28, %v1359_v28 }
 0x159   : > { %v445_v51 = vpop.f32.mrb[7].mxu0  ;;  %v1371_v52 = vpop.f32.mrb[7].mxu1  ;;  %v601_v59 = vmul.f32 %v861_v49, %v861_v49 }
 0x15a   : > { %v629_v53 = vadd.f32 %v628_v48, %v598_v47  ;;  %v558_v54 = vadd.f32 %v557_v46, %v445_v51  ;;  %v599_v55 = vmul.f32 %v445_v51, %v445_v51  ;;  %v612_v51 = vmul.f32 %v1357_v26, %v1357_v26 }
 0x15c   : > { %v559_v57 = vadd.f32 %v860_v41, %v558_v54  ;;  %v630_v58 = vadd.f32 %v629_v53, %v599_v55  ;;  %v613_v55 = vmul.f32 %v1361_v30, %v1361_v30 }
 0x15e   : > { %v631_v60 = vadd.f32 %v630_v58, %v600_v56  ;;  %v864_v61 = vpop.f32.mrb[8].mxu0  ;;  %v560_v62 = vadd.f32 %v861_v49, %v559_v57  ;;  %v1373_v63 = vpop.f32.mrb[8].mxu1  ;;  %v611_v49 = vmul.f32 %v1363_v32, %v1363_v32 }
 0x15f   : > { %v458_v0 = vpop.f32.mrb[9].mxu0  ;;  %v522_v1 = vpop.f32.mrb[9].mxu1  ;;  %v604_v12 = vmul.f32 %v864_v61, %v864_v61 }
 0x160   : > { %v561_v2 = vadd.f32 %v560_v62, %v458_v0  ;;  %v602_v3 = vmul.f32 %v458_v0, %v458_v0  ;;  %v632_v4 = vadd.f32 %v631_v60, %v601_v59  ;;  %v865_v5 = vpop.f32.mrb[10].mxu0  ;;  %v1375_v6 = vpop.f32.mrb[10].mxu1 }
 0x161   : > { %v461_v7 = vpop.f32.mrb[11].mxu0  ;;  %v525_v8 = vpop.f32.mrb[11].mxu1  ;;  %v605_v15 = vmul.f32 %v865_v5, %v865_v5 }
 0x162   : > { %v633_v9 = vadd.f32 %v632_v4, %v602_v3  ;;  %v562_v10 = vadd.f32 %v561_v2, %v461_v7  ;;  %v603_v11 = vmul.f32 %v461_v7, %v461_v7 }
 0x164   : > { %v563_v13 = vadd.f32 %v864_v61, %v562_v10  ;;  %v634_v14 = vadd.f32 %v633_v9, %v603_v11  ;;  %v615_v61 = vmul.f32 %v1371_v52, %v1371_v52  ;;  %v619_v10 = vmul.f32 %v525_v8, %v525_v8 }
 0x166   : > { %v635_v16 = vadd.f32 %v634_v14, %v604_v12  ;;  %v868_v17 = vpop.f32.mrb[12].mxu0  ;;  %v564_v18 = vadd.f32 %v865_v5, %v563_v13  ;;  %v884_v19 = vpop.f32.mrb[12].mxu1 }
 0x167   : > { %v474_v20 = vpop.f32.mrb[13].mxu0  ;;  %v538_v21 = vpop.f32.mrb[13].mxu1  ;;  %v608_v36 = vmul.f32 %v868_v17, %v868_v17 }
 0x168   : > { %v565_v22 = vadd.f32 %v564_v18, %v474_v20  ;;  %v606_v23 = vmul.f32 %v474_v20, %v474_v20  ;;  %v636_v24 = vadd.f32 %v635_v16, %v605_v15  ;;  %v869_v25 = vpop.f32.mrb[14].mxu0  ;;  %v885_v27 = vpop.f32.mrb[14].mxu1  ;;  %v622_v15 = vmul.f32 %v538_v21, %v538_v21 }
 0x169   : > { %v477_v29 = vpop.f32.mrb[15].mxu0  ;;  %v541_v31 = vpop.f32.mrb[15].mxu1  ;;  %v609_v39 = vmul.f32 %v869_v25, %v869_v25  ;;  %v624_v20 = vmul.f32 %v884_v19, %v884_v19 }
 0x16a   : > { %v637_v33 = vadd.f32 %v636_v24, %v606_v23  ;;  %v566_v34 = vadd.f32 %v565_v22, %v477_v29  ;;  %v607_v35 = vmul.f32 %v477_v29, %v477_v29  ;;  %v623_v18 = vmul.f32 %v541_v31, %v541_v31 }
 0x16b   : > { %v625_v23 = vmul.f32 %v885_v27, %v885_v27 }
 0x16c   : > { %v567_v37 = vadd.f32 %v868_v17, %v566_v34  ;;  %v638_v38 = vadd.f32 %v637_v33, %v607_v35 }
 0x16e   : > { %v639_v40 = vadd.f32 %v638_v38, %v608_v36  ;;  %v568_v41 = vadd.f32 %v869_v25, %v567_v37 }
 0x170   : > { %v569_v44 = vadd.f32 %v568_v41, %v1359_v28  ;;  %v640_v46 = vadd.f32 %v639_v40, %v609_v39  ;;  %v614_v28 = vmul.f32 %v1367_v45, %v1367_v45  ;;  %v553_v39 = vld [vmem:[#allocation2] sm:$0x1]  ;;  %v593_v40 = vld [vmem:[#allocation2 + $0x1] sm:$0x1] }
 0x172   : > { %v641_v47 = vadd.f32 %v640_v46, %v610_v42  ;;  %v570_v48 = vadd.f32 %v569_v44, %v1363_v32 }
 0x174   : > { %v571_v53 = vadd.f32 %v1357_v26, %v570_v48  ;;  %v642_v54 = vadd.f32 %v641_v47, %v611_v49  ;;  %v616_v26 = vmul.f32 %v1365_v43, %v1365_v43 }
 0x176   : > { %v643_v56 = vadd.f32 %v642_v54, %v612_v51  ;;  %v572_v57 = vadd.f32 %v1361_v30, %v571_v53  ;;  %v617_v30 = vmul.f32 %v1369_v50, %v1369_v50 }
 0x178   : > { %v573_v58 = vadd.f32 %v572_v57, %v1367_v45  ;;  %v644_v59 = vadd.f32 %v643_v56, %v613_v55  ;;  %v618_v45 = vmul.f32 %v522_v1, %v522_v1 }
 0x17a   : > { %v645_v60 = vadd.f32 %v644_v59, %v614_v28  ;;  %v574_v32 = vadd.f32 %v573_v58, %v1371_v52  ;;  %v620_v52 = vmul.f32 %v1373_v63, %v1373_v63 }
 0x17c   : > { %v575_v62 = vadd.f32 %v1365_v43, %v574_v32  ;;  %v646_v0 = vadd.f32 %v645_v60, %v615_v61  ;;  %v621_v43 = vmul.f32 %v1375_v6, %v1375_v6 }
 0x17e   : > { %v647_v2 = vadd.f32 %v646_v0, %v616_v26  ;;  %v576_v3 = vadd.f32 %v1369_v50, %v575_v62 }
 0x180   : > { %v577_v4 = vadd.f32 %v576_v3, %v522_v1  ;;  %v648_v5 = vadd.f32 %v647_v2, %v617_v30 }
 0x182   : > { %v649_v7 = vadd.f32 %v648_v5, %v618_v45  ;;  %v578_v9 = vadd.f32 %v577_v4, %v525_v8 }
 0x184   : > { %v579_v11 = vadd.f32 %v1373_v63, %v578_v9  ;;  %v650_v12 = vadd.f32 %v649_v7, %v619_v10 }
 0x186   : > { %v651_v13 = vadd.f32 %v650_v12, %v620_v52  ;;  %v580_v14 = vadd.f32 %v1375_v6, %v579_v11 }
 0x188   : > { %v581_v50 = vadd.f32 %v580_v14, %v538_v21  ;;  %v652_v16 = vadd.f32 %v651_v13, %v621_v43 }
 0x18a   : > { %v653_v1 = vadd.f32 %v652_v16, %v622_v15  ;;  %v582_v17 = vadd.f32 %v581_v50, %v541_v31 }
 0x18c   : > { %v583_v8 = vadd.f32 %v884_v19, %v582_v17  ;;  %v654_v22 = vadd.f32 %v653_v1, %v623_v18 }
 0x18e   : > { %v584_v24 = vadd.f32 %v885_v27, %v583_v8  ;;  %v655_v25 = vadd.f32 %v654_v22, %v624_v20 }
 0x190   : > { %v585_v63 = vrot.slane %v584_v24, 4  ;;  %v656_v29 = vadd.f32 %v655_v25, %v625_v23 }
 0x192   : > { %v586_v33 = vadd.f32 %v585_v63, %v584_v24  ;;  %v657_v34 = vrot.slane %v656_v29, 4 }
 0x194   : > { %v587_v35 = vrot.slane %v586_v33, 2  ;;  %v658_v6 = vadd.f32 %v657_v34, %v656_v29 }
 0x196   : > { %v588_v36 = vadd.f32 %v587_v35, %v586_v33  ;;  %v659_v21 = vrot.slane %v658_v6, 2 }
 0x198   : > { %v589_v37 = vrot.slane %v588_v36, 1  ;;  %v660_v38 = vadd.f32 %v659_v21, %v658_v6 }
 0x19a   : > { %v590_v31 = vadd.f32 %v589_v37, %v588_v36  ;;  %v661_v19 = vrot.slane %v660_v38, 1 }
 0x19c   : > { %v591_v41 = vadd.f32 %v590_v31, %v553_v39  ;;  %v662_v27 = vadd.f32 %v661_v19, %v660_v38 }
 0x19e   : > { %592 = vst [vmem:[#allocation2] sm:$0x1] %v591_v41  ;;  %v663_v42 = vadd.f32 %v662_v27, %v593_v40 }
 0x1a0   : > { %664 = vst [vmem:[#allocation2 + $0x1] sm:$0x1] %v663_v42 }
 0x1a7   : > { %v668_v44 = vld [vmem:[#allocation2] sm:$0x3] }
 0x1a8   : > { %669 = vst [vmem:[%s191_s21] sm:$0x3] %v668_v44 }
 0x1a9   : > { %1073 = shalt.err (!%p1070_p5)
}
 0x1aa   : > { %s1074_s3 = scalar_lea.hbm %s1412_s5, 32  ;;  %s1078_s16 = scalar_lea.hbm %s1463_s2, 64 }
 0x1ab   : > { %p1075_p9 = scmp.ne.s32.totalorder %s1412_s5, %s1074_s3  ;;  %p1079_p3 = scmp.lt.u32.totalorder %s1412_s5, %s1463_s2 }
 0x1ac   : > { %p1080_p7 = scmp.lt.u32.totalorder %s1078_s16, %s1074_s3  ;;  %p1082_p4 = scmp.lt.u32.totalorder %s1074_s3, %s1412_s5 }
 0x1ad   : > { %p1076_p1 = pnand %p1075_p9, %p1268_p10 }
 0x1ae   : > { %p1081_p13 = por %p1080_p7, %p1079_p3 }
 0x1af   : > { %p1077_p2 = pneg %p1076_p1 }
 0x1b0   : > { %p1083_p6 = por %p1082_p4, %p1081_p13 }
 0x1b2   : > { %p1084_p8 = pnand %p1083_p6, %p1077_p2 }
 0x1b4   : > { %1087 = shalt.err (!%p1084_p8)
}
 0x1b5   : > { %908 = dma.vmem_to_hbm [thread:$0]  (%p1268_p10), %s1414_s6, 32, %s1412_s5, %s671_s8  }
 0x1b6 PF: > { %s696_s29 = sand.u32 1, %s1126_s9   ;;  %p1481_p12 = scmp.ne.s32.totalorder %s1471_s20, 0 }
 0x1b7   : > { %p1482_p11 = scmp.ge.s32.totalorder %s1146_s14, 2  ;;  %s697_s17 = scalar_lea.sflag [#allocation5], %s696_s29 }
 0x1b9   : > { %p919_p0 = pnand %p1482_p11, %p1481_p12 }
 0x1bb   : > { %1121 = dma.done.wait (!%p919_p0), %s697_s17, 32  }
 0x1bc   : > { %1123 = vsyncadd (!%p919_p0), %s697_s17, 4294967264  ;;  %s19_s14 = sadd.s32 1, %s1146_s14   ;;  %s1483_s9 = smov %s1130_s10 }
 0x1bd   : > { %p16_p5 = scmp.ge.s32.totalorder %s19_s14, 4   ;;  %s1484_s10 = smov %s1134_s11 }
 0x1be   : > { %s1485_s11 = smov %s1277_s28  ;;  %s1486_s12 = smov %s1142_s13 }
 0x1bf   : > { %s1487_s13 = smov %s1489_s25  ;;  %18 = sbr.rel (!%p16_p5) target bundleno = 7 (0x7), region = 85 }
 0x1c6   :  { %702 = vsyncpa [#allocation4], 1 }
 0x1c7   :  { %704 = vsyncpa [#allocation4 + $0x1], 1 }
 0x1c8   :  { %705 = vsyncpa [#allocation7], 1 }
 0x1c9   :  { %706 = vsyncpa [#allocation5], 1 }
 0x1ca   :  { %708 = vsyncpa [#allocation5 + $0x1], 1 }

</bundles_post_ra>
